<compile_context>
chip_gen: v5e
topology: v5e:2x2
jax: 0.10.0
libtpu: 0.0.40
codegen_flags: <defaults>
</compile_context>

<pallas_src>
import jax
import jax.numpy as jnp
from jax import lax
from jax.experimental import pallas as pl
from jax.experimental.pallas import tpu as pltpu


def _round_up(n, m):
    return ((n + m - 1) // m) * m


def _cdiv(a, b):
    return (a + b - 1) // b


def photoz_mlp_kernel(x_ref, w1t_ref, b1t_ref, w2t_ref, b2t_ref,
                      wht_ref, bht_ref, out_ref):
    """One batch tile, feature-major activations (lanes = batch).

    x_ref:   (TB, d_in)
    w1t_ref: (hidden, d_in)    b1t_ref: (hidden, 1)
    w2t_ref: (hidden, hidden)  b2t_ref: (hidden, 1)
    wht_ref: (2, hidden)       bht_ref: (2, 1)
    out_ref: (2, TB)  -- row 0 = z_mu, row 1 = z_sigma
    """
    x = x_ref[...]                                                   # (TB, d_in)

    # Layer 1: h1[f, b] = sum_k w1t[f, k] * x[b, k]  (rhs contracted on last dim).
    h1 = lax.dot_general(w1t_ref[...], x,
                         dimension_numbers=(((1,), (1,)), ((), ())),
                         preferred_element_type=jnp.float32)
    h1 = jnp.maximum(h1 + b1t_ref[...], 0.0)                          # (hidden, TB) f32

    # Layer 2: plain matmul in feature-major form (f32 accumulation on the MXU).
    h2 = lax.dot_general(w2t_ref[...], h1.astype(w2t_ref.dtype),
                         dimension_numbers=(((1,), (0,)), ((), ())),
                         preferred_element_type=jnp.float32)
    h2 = jnp.maximum(h2 + b2t_ref[...], 0.0)                          # (hidden, TB) f32

    # Fused mu/std head, produced directly in the (2, TB) output layout (f32).
    head = lax.dot_general(wht_ref[...], h2.astype(wht_ref.dtype),
                           dimension_numbers=(((1,), (0,)), ((), ())),
                           preferred_element_type=jnp.float32)
    head = head + bht_ref[...]                                        # (2, TB)

    # Row 0 -> z_mu, row 1 -> clip(exp(.), 0.01, 10). exp over both rows is cheap
    # EUP-slot work; the row-select keeps a single unmasked lane-dense store.
    sigma = jnp.clip(jnp.exp(head), 0.01, 10.0)
    row = lax.broadcasted_iota(jnp.int32, head.shape, 0)
    out_ref[...] = jnp.where(row == 0, head, sigma).astype(out_ref.dtype)


def photoz_mlp(x, params, *, tile_batch=4096, input_dtype=jnp.bfloat16):
    """x: (B, input_dim). Returns (z_mu, z_sigma), each shape (B,) float32.

    tile_batch:  batch tile size (multiple of 128) used when B > tile_batch.
    input_dtype: dtype for x / w1 / w2 operands (bf16 default halves the dominant
                 HBM stream; pass None for full f32 operands). Accumulation and
                 all elementwise math stay f32 either way.
    """
    w1, b1, w2, b2, wmu, bmu, wstd, bstd = params
    B, d_in = x.shape
    hidden = w1.shape[1]

    # Pre-transposed (feature-major) weights/biases -- negligible, done in JAX.
    w1t = w1.T                                           # (hidden, d_in)
    b1t = b1.T                                           # (hidden, 1)
    w2t = w2.T                                           # (hidden, hidden)
    b2t = b2.T                                           # (hidden, 1)
    wht = jnp.concatenate([wmu, wstd], axis=1).T         # (2, hidden), kept f32
    bht = jnp.concatenate([bmu, bstd], axis=1).T         # (2, 1)

    if input_dtype is not None:
        x = x.astype(input_dtype)
        w1t = w1t.astype(input_dtype)
        w2t = w2t.astype(input_dtype)

    # Batch tiling: single 128-rounded tile for small B, else tile_batch tiles
    # with an even tile count (so both v7x TensorCores get work).
    if B <= tile_batch:
        tb = max(128, _round_up(B, 128))
        num_tiles = 1
    else:
        assert tile_batch % 128 == 0, "tile_batch must be a multiple of 128"
        tb = tile_batch
        num_tiles = _cdiv(B, tb)
        if num_tiles > 1 and num_tiles % 2:
            num_tiles += 1
    b_pad = num_tiles * tb
    if b_pad != B:
        x = jnp.pad(x, ((0, b_pad - B), (0, 0)))

    def resident(a):
        # Constant index_map -> fetched once, VMEM-resident across the grid.
        # Single-buffered: no pointless second buffer / prologue DMA.
        try:
            return pl.BlockSpec(a.shape, lambda i: (0, 0),
                                pipeline_mode=pl.Buffered(1))
        except (TypeError, AttributeError):
            return pl.BlockSpec(a.shape, lambda i: (0, 0))

    x_itemsize = jnp.dtype(x.dtype).itemsize
    # VMEM budget: x block is lane-padded d_in->128 and double-buffered, plus
    # (hidden, tb) f32 activation temporaries. Never go below the 32 MiB default.
    vmem_need = (2 * tb * 128 * x_itemsize          # x block, double-buffered
                 + 6 * hidden * tb * 4              # f32 activation temporaries
                 + 2 * 2 * tb * 4                   # output block, double-buffered
                 + (1 << 20))                       # weights/biases + slack
    vmem_limit = int(min(48 << 20, max(32 << 20, vmem_need)))

    flops = 2 * b_pad * (d_in * hidden + hidden * hidden + hidden * 2)
    bytes_accessed = (int(x.size) * x_itemsize
                      + sum(int(a.size) * a.dtype.itemsize
                            for a in (w1t, b1t, w2t, b2t, wht, bht))
                      + 2 * b_pad * 4)

    out = pl.pallas_call(
        photoz_mlp_kernel,
        out_shape=jax.ShapeDtypeStruct((2, b_pad), jnp.float32),
        grid=(num_tiles,),
        in_specs=[
            pl.BlockSpec((tb, d_in), lambda i: (i, 0)),   # x: streamed per batch tile
            resident(w1t), resident(b1t),
            resident(w2t), resident(b2t),
            resident(wht), resident(bht),
        ],
        out_specs=pl.BlockSpec((2, tb), lambda i: (0, i)),  # lane-dense output slab
        compiler_params=pltpu.CompilerParams(
            dimension_semantics=("parallel",),
            vmem_limit_bytes=vmem_limit),
        cost_estimate=pl.CostEstimate(flops=flops, transcendentals=2 * b_pad,
                                      bytes_accessed=bytes_accessed),
    )(x, w1t, b1t, w2t, b2t, wht, bht)

    return out[0, :B], out[1, :B]


def init_params(key, input_dim=10, hidden_dim=64):
    """Deterministic PyTorch-style init: U(-1/sqrt(fan_in), 1/sqrt(fan_in))."""
    ks = jax.random.split(key, 8)

    def linear(kw, kb, fan_in, fan_out):
        bound = 1.0 / jnp.sqrt(jnp.float32(fan_in))
        w = jax.random.uniform(kw, (fan_in, fan_out), jnp.float32, -bound, bound)
        b = jax.random.uniform(kb, (1, fan_out), jnp.float32, -bound, bound)
        return w, b

    w1, b1 = linear(ks[0], ks[1], input_dim, hidden_dim)
    w2, b2 = linear(ks[2], ks[3], hidden_dim, hidden_dim)
    wmu, bmu = linear(ks[4], ks[5], hidden_dim, 1)
    wstd, bstd = linear(ks[6], ks[7], hidden_dim, 1)
    return (w1, b1, w2, b2, wmu, bmu, wstd, bstd)


def reference_forward(x, params, input_dtype=None):
    """Pure-JAX reference matching the PyTorch module semantics (HIGHEST precision)."""
    w1, b1, w2, b2, wmu, bmu, wstd, bstd = params
    if input_dtype is not None:
        x = x.astype(input_dtype)
        w1 = w1.astype(input_dtype)
        w2 = w2.astype(input_dtype)
    hi = lax.Precision.HIGHEST
    h = jnp.maximum(jnp.dot(x, w1, preferred_element_type=jnp.float32,
                            precision=hi) + b1, 0.0)
    h = jnp.maximum(jnp.dot(h.astype(w2.dtype), w2, preferred_element_type=jnp.float32,
                            precision=hi) + b2, 0.0)
    z_mu = (jnp.dot(h, wmu, precision=hi) + bmu)[:, 0]
    raw_std = (jnp.dot(h, wstd, precision=hi) + bstd)[:, 0]
    z_sigma = jnp.clip(jnp.exp(raw_std), 0.01, 10.0)
    return z_mu, z_sigma


if __name__ == "__main__":
    key = jax.random.PRNGKey(0)
    k_param, k_x1, k_x2 = jax.random.split(key, 3)

    input_dim, hidden_dim = 10, 64
    params = init_params(k_param, input_dim, hidden_dim)

    # Case 1: small batch (13 -> padded to 128), f32 operands, single-tile grid.
    # Tolerance covers MXU pass-precision differences between the XLA reference
    # and the Mosaic matmuls; structural errors would be orders of magnitude larger.
    batch = 13
    x = jax.random.normal(k_x1, (batch, input_dim), jnp.float32)
    z_mu, z_sigma = photoz_mlp(x, params, input_dtype=None)
    jax.block_until_ready((z_mu, z_sigma))
    ref_mu, ref_sigma = reference_forward(x, params)
    assert z_mu.shape == (batch,) and z_sigma.shape == (batch,)
    assert jnp.allclose(z_mu, ref_mu, atol=2e-2, rtol=2e-2)
    assert jnp.allclose(z_sigma, ref_sigma, atol=2e-2, rtol=2e-2)

    # Case 2: multi-tile grid (even tile count: grid=(4,)) with default bf16
    # x/w1/w2 operands and f32 accumulation.
    batch2 = 320
    x2 = jax.random.normal(k_x2, (batch2, input_dim), jnp.float32)
    z_mu2, z_sigma2 = photoz_mlp(x2, params, tile_batch=128)
    jax.block_until_ready((z_mu2, z_sigma2))
    ref_mu2, ref_sigma2 = reference_forward(x2, params, input_dtype=jnp.bfloat16)
    assert z_mu2.shape == (batch2,) and z_sigma2.shape == (batch2,)
    assert jnp.allclose(z_mu2, ref_mu2, atol=2e-2, rtol=2e-2)
    assert jnp.allclose(z_sigma2, ref_sigma2, atol=2e-2, rtol=2e-2)

    print("KERNEL_OK")
</pallas_src>

<mosaic_0001>
module attributes {stable_mosaic.version = 11 : i64} {
  func.func @photoz_mlp_kernel(%arg0: i32, %arg1: memref<128x10xf32, #tpu.memory_space<vmem>>, %arg2: memref<64x10xf32, #tpu.memory_space<vmem>>, %arg3: memref<64x1xf32, #tpu.memory_space<vmem>>, %arg4: memref<64x64xf32, #tpu.memory_space<vmem>>, %arg5: memref<64x1xf32, #tpu.memory_space<vmem>>, %arg6: memref<2x64xf32, #tpu.memory_space<vmem>>, %arg7: memref<2x1xf32, #tpu.memory_space<vmem>>, %arg8: memref<2x128xf32, #tpu.memory_space<vmem>>) attributes {dimension_semantics = [#tpu.dimension_semantics<parallel>], iteration_bounds = array<i64: 1>, scalar_prefetch = 0 : i64, scratch_operands = 0 : i64, tpu.core_type = #tpu.core_type<tc>, window_params = [{transform_indices = @transform_0, window_bounds = array<i64: 128, 10>}, {pipeline_mode = #tpu.pipeline_mode<synchronous>, transform_indices = @transform_1, window_bounds = array<i64: 64, 10>}, {pipeline_mode = #tpu.pipeline_mode<synchronous>, transform_indices = @transform_2, window_bounds = array<i64: 64, 1>}, {pipeline_mode = #tpu.pipeline_mode<synchronous>, transform_indices = @transform_3, window_bounds = array<i64: 64, 64>}, {pipeline_mode = #tpu.pipeline_mode<synchronous>, transform_indices = @transform_4, window_bounds = array<i64: 64, 1>}, {pipeline_mode = #tpu.pipeline_mode<synchronous>, transform_indices = @transform_5, window_bounds = array<i64: 2, 64>}, {pipeline_mode = #tpu.pipeline_mode<synchronous>, transform_indices = @transform_6, window_bounds = array<i64: 2, 1>}, {transform_indices = @transform_7, window_bounds = array<i64: 2, 128>}]} {
    %c0 = arith.constant 0 : index
    %c0_0 = arith.constant 0 : index
    %0 = vector.load %arg1[%c0, %c0_0] : memref<128x10xf32, #tpu.memory_space<vmem>>, vector<128x10xf32>
    %c0_1 = arith.constant 0 : index
    %c0_2 = arith.constant 0 : index
    %1 = vector.load %arg2[%c0_1, %c0_2] : memref<64x10xf32, #tpu.memory_space<vmem>>, vector<64x10xf32>
    %cst = arith.constant dense<0.000000e+00> : vector<64x128xf32>
    %2 = tpu.matmul %1, %0, %cst {dimension_numbers = #tpu.dot_dimension_numbers<[1], [1], [0], [0], [0, 0, 1, 0], [], []>} : vector<64x10xf32>, vector<128x10xf32>, vector<64x128xf32> -> vector<64x128xf32>
    %c0_3 = arith.constant 0 : index
    %c0_4 = arith.constant 0 : index
    %3 = vector.load %arg3[%c0_3, %c0_4] : memref<64x1xf32, #tpu.memory_space<vmem>>, vector<64x1xf32>
    %4 = vector.broadcast %3 : vector<64x1xf32> to vector<64x128xf32>
    %5 = arith.addf %2, %4 : vector<64x128xf32>
    %cst_5 = arith.constant 0.000000e+00 : f32
    %6 = vector.broadcast %cst_5 : f32 to vector<64x128xf32>
    %7 = arith.maximumf %5, %6 : vector<64x128xf32>
    %c0_6 = arith.constant 0 : index
    %c0_7 = arith.constant 0 : index
    %8 = vector.load %arg4[%c0_6, %c0_7] : memref<64x64xf32, #tpu.memory_space<vmem>>, vector<64x64xf32>
    %cst_8 = arith.constant dense<0.000000e+00> : vector<64x128xf32>
    %9 = tpu.matmul %8, %7, %cst_8 {dimension_numbers = #tpu.dot_dimension_numbers<[1], [0], [0], [1], [0, 0, 1, 1], [], []>} : vector<64x64xf32>, vector<64x128xf32>, vector<64x128xf32> -> vector<64x128xf32>
    %c0_9 = arith.constant 0 : index
    %c0_10 = arith.constant 0 : index
    %10 = vector.load %arg5[%c0_9, %c0_10] : memref<64x1xf32, #tpu.memory_space<vmem>>, vector<64x1xf32>
    %11 = vector.broadcast %10 : vector<64x1xf32> to vector<64x128xf32>
    %12 = arith.addf %9, %11 : vector<64x128xf32>
    %cst_11 = arith.constant 0.000000e+00 : f32
    %13 = vector.broadcast %cst_11 : f32 to vector<64x128xf32>
    %14 = arith.maximumf %12, %13 : vector<64x128xf32>
    %c0_12 = arith.constant 0 : index
    %c0_13 = arith.constant 0 : index
    %15 = vector.load %arg6[%c0_12, %c0_13] : memref<2x64xf32, #tpu.memory_space<vmem>>, vector<2x64xf32>
    %cst_14 = arith.constant dense<0.000000e+00> : vector<2x128xf32>
    %16 = tpu.matmul %15, %14, %cst_14 {dimension_numbers = #tpu.dot_dimension_numbers<[1], [0], [0], [1], [0, 0, 1, 1], [], []>} : vector<2x64xf32>, vector<64x128xf32>, vector<2x128xf32> -> vector<2x128xf32>
    %c0_15 = arith.constant 0 : index
    %c0_16 = arith.constant 0 : index
    %17 = vector.load %arg7[%c0_15, %c0_16] : memref<2x1xf32, #tpu.memory_space<vmem>>, vector<2x1xf32>
    %18 = vector.broadcast %17 : vector<2x1xf32> to vector<2x128xf32>
    %19 = arith.addf %16, %18 : vector<2x128xf32>
    %20 = math.exp %19 : vector<2x128xf32>
    %cst_17 = arith.constant 0.00999999977 : f32
    %cst_18 = arith.constant 1.000000e+01 : f32
    %21 = vector.broadcast %cst_17 : f32 to vector<2x128xf32>
    %22 = arith.maximumf %21, %20 : vector<2x128xf32>
    %23 = vector.broadcast %cst_18 : f32 to vector<2x128xf32>
    %24 = arith.minimumf %23, %22 : vector<2x128xf32>
    %25 = tpu.iota {dimensions = array<i32: 0>} : vector<2x128xi32>
    %c0_i32 = arith.constant 0 : i32
    %26 = vector.broadcast %c0_i32 : i32 to vector<2x128xi32>
    %27 = arith.cmpi eq, %25, %26 : vector<2x128xi32>
    %28 = arith.select %27, %19, %24 : vector<2x128xi1>, vector<2x128xf32>
    %c0_19 = arith.constant 0 : index
    %c0_20 = arith.constant 0 : index
    %29 = vector.load %arg8[%c0_19, %c0_20] : memref<2x128xf32, #tpu.memory_space<vmem>>, vector<2x128xf32>
    tpu.vector_store %arg8[%c0_19, %c0_20], %28 {strides = array<i32>} : memref<2x128xf32, #tpu.memory_space<vmem>>, vector<2x128xf32>,
    return
  }
  func.func @transform_0(%arg0: i32) -> (i32, i32) {
    %c0_i32 = arith.constant 0 : i32
    %c0_i32_0 = arith.constant 0 : i32
    return %arg0, %c0_i32 : i32, i32
  }
  func.func @transform_1(%arg0: i32) -> (i32, i32) {
    %c0_i32 = arith.constant 0 : i32
    %c0_i32_0 = arith.constant 0 : i32
    %c0_i32_1 = arith.constant 0 : i32
    return %c0_i32, %c0_i32_0 : i32, i32
  }
  func.func @transform_2(%arg0: i32) -> (i32, i32) {
    %c0_i32 = arith.constant 0 : i32
    %c0_i32_0 = arith.constant 0 : i32
    %c0_i32_1 = arith.constant 0 : i32
    return %c0_i32, %c0_i32_0 : i32, i32
  }
  func.func @transform_3(%arg0: i32) -> (i32, i32) {
    %c0_i32 = arith.constant 0 : i32
    %c0_i32_0 = arith.constant 0 : i32
    %c0_i32_1 = arith.constant 0 : i32
    return %c0_i32, %c0_i32_0 : i32, i32
  }
  func.func @transform_4(%arg0: i32) -> (i32, i32) {
    %c0_i32 = arith.constant 0 : i32
    %c0_i32_0 = arith.constant 0 : i32
    %c0_i32_1 = arith.constant 0 : i32
    return %c0_i32, %c0_i32_0 : i32, i32
  }
  func.func @transform_5(%arg0: i32) -> (i32, i32) {
    %c0_i32 = arith.constant 0 : i32
    %c0_i32_0 = arith.constant 0 : i32
    %c0_i32_1 = arith.constant 0 : i32
    return %c0_i32, %c0_i32_0 : i32, i32
  }
  func.func @transform_6(%arg0: i32) -> (i32, i32) {
    %c0_i32 = arith.constant 0 : i32
    %c0_i32_0 = arith.constant 0 : i32
    %c0_i32_1 = arith.constant 0 : i32
    return %c0_i32, %c0_i32_0 : i32, i32
  }
  func.func @transform_7(%arg0: i32) -> (i32, i32) {
    %c0_i32 = arith.constant 0 : i32
    %c0_i32_0 = arith.constant 0 : i32
    return %c0_i32, %arg0 : i32, i32
  }
}

</mosaic_0001>

<bundles_post_ra>
// kernel: tpu_custom_call.1
= control target key start
LH: loop header
LB: loop body
LE: loop exit
PB: predicated region body
PF: predicated region fallthrough
CT: control target
= control target key end

     0   :  { %vm99_vm0 = vcmask 80896   ;;  %s764_s0 = inlined_call_operand.vmem [shape: f32[128,10], index: 0, kind: input, shape index: {}]   ;;  %s765_s1 = inlined_call_operand.vmem [shape: f32[64,10], index: 1, kind: input, shape index: {}]   ;;  %s766_s2 = inlined_call_operand.vmem [shape: f32[64,1], index: 2, kind: input, shape index: {}]   ;;  %s767_s3 = inlined_call_operand.vmem [shape: f32[64,64], index: 3, kind: input, shape index: {}]   ;;  %s768_s4 = inlined_call_operand.vmem [shape: f32[64,1], index: 4, kind: input, shape index: {}]   ;;  %s769_s5 = inlined_call_operand.vmem [shape: f32[2,64], index: 5, kind: input, shape index: {}]   ;;  %s770_s6 = inlined_call_operand.vmem [shape: f32[2,1], index: 6, kind: input, shape index: {}]   ;;  %s771_s7 = inlined_call_operand.hbm [shape: f32[2,128], index: 7, kind: output, shape index: {}]  }
   0x1   :  { %v42_v0 = vld [vmem:[%s764_s0 + $0x78] sm:$0xff]  ;;  %v41_v1 = vld [vmem:[%s764_s0 + $0x70] sm:$0xff] }
   0x2   :  { %440 = vmatpush.xpose.msk.msra.mxu3 %vm99_vm0, %v42_v0  ;;  %439 = vmatpush.xpose.msk.msra.mxu2 %vm99_vm0, %v42_v0 }
   0x3   :  { %406 = vmatpush.xpose.msk.msra.mxu0 %vm99_vm0, %v42_v0 }
   0x4   :  { %12 = vsyncpa [#allocation3], 0  ;;  %v40_v2 = vld [vmem:[%s764_s0 + $0x68] sm:$0xff]  ;;  %v39_v3 = vld [vmem:[%s764_s0 + $0x60] sm:$0xff]  ;;  %v504_v7 = vmov 0   ;;  %vm277_vm1 = vcmask 523264  }
   0x5   :  { %v38_v4 = vld [vmem:[%s764_s0 + $0x58] sm:$0xff]  ;;  %v37_v6 = vld [vmem:[%s764_s0 + $0x50] sm:$0xff]  ;;  %473 = vset.pattern.permute.xlu0 %v504_v7  ;;  %474 = vset.pattern.permute.xlu1 %v504_v7  ;;  %v56_v8 = vld [vmem:[%s766_s2 + $0x28] sm:$0xff]  ;;  %s505_s23 = smov [#allocation2]   ;;  %s397_s27 = sshll.u32 %s771_s7, 4  ;;  %s398_s27 = int_to_ptr.hbm [resolvable:$true] %s397_s27 }
   0x6   :  { %442 = vmatpush.xpose.msk.msra.mxu3 %vm99_vm0, %v41_v1  ;;  %441 = vmatpush.xpose.msk.msra.mxu2 %vm99_vm0, %v41_v1  ;;  %v58_v5 = vld [vmem:[%s766_s2 + $0x38] sm:$0xff]  ;;  %v36_v9 = vld [vmem:[%s764_s0 + $0x48] sm:$0xff]  ;;  %v57_v10 = vld [vmem:[%s766_s2 + $0x30] sm:$0xff]  ;;  %s395_s24 = sshll.u32 %s505_s23, 4  ;;  %s396_s24 = int_to_ptr.vmem [resolvable:$true] %s395_s24 }
   0x7   :  { %407 = vmatpush.xpose.msk.msra.mxu0 %vm99_vm0, %v41_v1  ;;  %96 = vperm.xlu0 %473, %v58_v5   ;;  %v35_v11 = vld [vmem:[%s764_s0 + $0x40] sm:$0xff]  ;;  %v34_v13 = vld [vmem:[%s764_s0 + $0x38] sm:$0xff]  ;;  %v52_v14 = vld [vmem:[%s766_s2 + $0x8] sm:$0xff] }
   0x8   :  { %475 = vset.pattern.permute.xlu2 %v504_v7  ;;  %86 = vperm.xlu1 %474, %v56_v8   ;;  %v55_v12 = vld [vmem:[%s766_s2 + $0x20] sm:$0xff]  ;;  %v33_v15 = vld [vmem:[%s764_s0 + $0x30] sm:$0xff]  ;;  %v32_v17 = vld [vmem:[%s764_s0 + $0x28] sm:$0xff] }
   0x9   :  { %v51_v16 = vld [vmem:[%s766_s2] sm:$0xff]  ;;  %v235_v18 = vld [vmem:[%s768_s4 + $0x30] sm:$0xff]  ;;  %v234_v20 = vld [vmem:[%s768_s4 + $0x28] sm:$0xff] }
   0xa   :  { %444 = vmatpush.xpose.msk.msra.mxu3 %vm99_vm0, %v40_v2  ;;  %443 = vmatpush.xpose.msk.msra.mxu2 %vm99_vm0, %v40_v2  ;;  %v31_v19 = vld [vmem:[%s764_s0 + $0x20] sm:$0xff]  ;;  %v30_v21 = vld [vmem:[%s764_s0 + $0x18] sm:$0xff]  ;;  %v29_v24 = vld [vmem:[%s764_s0 + $0x10] sm:$0xff] }
   0xb   :  { %408 = vmatpush.xpose.msk.msra.mxu0 %vm99_vm0, %v40_v2  ;;  %v232_v22 = vld [vmem:[%s768_s4 + $0x18] sm:$0xff]  ;;  %v231_v25 = vld [vmem:[%s768_s4 + $0x10] sm:$0xff]  ;;  %v28_v26 = vld [vmem:[%s764_s0 + $0x8] sm:$0xff] }
   0xc   :  { %v54_v23 = vld [vmem:[%s766_s2 + $0x18] sm:$0xff]  ;;  %v53_v27 = vld [vmem:[%s766_s2 + $0x10] sm:$0xff]  ;;  %v229_v28 = vld [vmem:[%s768_s4] sm:$0xff] }
   0xd   :  { %76 = vperm.xlu2 %475, %v54_v23   ;;  %v27_v29 = vld [vmem:[%s764_s0] sm:$0xff]  ;;  %v48_v31 = vld [vmem:[%s765_s1 + $0x28] sm:$0xff]  ;;  %v46_v32 = vld [vmem:[%s765_s1 + $0x18] sm:$0xff] }
   0xe   :  { %446 = vmatpush.xpose.msk.msra.mxu3 %vm99_vm0, %v39_v3  ;;  %445 = vmatpush.xpose.msk.msra.mxu2 %vm99_vm0, %v39_v3  ;;  %v352_v30 = vld [vmem:[%s770_s6] sm:$0x3]  ;;  %v236_v34 = vld [vmem:[%s768_s4 + $0x38] sm:$0xff]  ;;  %v49_v35 = vld [vmem:[%s765_s1 + $0x30] sm:$0xff] }
   0xf   :  { %409 = vmatpush.xpose.msk.msra.mxu0 %vm99_vm0, %v39_v3  ;;  %91 = vperm.xlu0 %473, %v57_v10   ;;  %v43_v33 = vld [vmem:[%s765_s1] sm:$0xff]  ;;  %v44_v37 = vld [vmem:[%s765_s1 + $0x8] sm:$0xff]  ;;  %v50_v39 = vld [vmem:[%s765_s1 + $0x38] sm:$0xff] }
  0x10   :  { %81 = vperm.xlu1 %474, %v55_v12   ;;  %v47_v36 = vld [vmem:[%s765_s1 + $0x20] sm:$0xff]  ;;  %v45_v40 = vld [vmem:[%s765_s1 + $0x10] sm:$0xff]  ;;  %v230_v41 = vld [vmem:[%s768_s4 + $0x8] sm:$0xff] }
  0x11   :  { %v233_v38 = vld [vmem:[%s768_s4 + $0x20] sm:$0xff]  ;;  %v223_v12 = vld [vmem:[%s767_s3 + $0x10] sm:$0xff] }
  0x12   :  { %448 = vmatpush.xpose.msk.msra.mxu3 %vm99_vm0, %v38_v4  ;;  %447 = vmatpush.xpose.msk.msra.mxu2 %vm99_vm0, %v38_v4  ;;  %v221_v10 = vld [vmem:[%s767_s3] sm:$0xff] }
  0x13   :  { %410 = vmatpush.xpose.msk.msra.mxu0 %vm99_vm0, %v38_v4 }
  0x15   :  { %71 = vperm.xlu2 %475, %v53_v27  }
  0x16   :  { %450 = vmatpush.xpose.msk.msra.mxu3 %vm99_vm0, %v37_v6  ;;  %449 = vmatpush.xpose.msk.msra.mxu2 %vm99_vm0, %v37_v6 }
  0x17   :  { %411 = vmatpush.xpose.msk.msra.mxu0 %vm99_vm0, %v37_v6  ;;  %66 = vperm.xlu0 %473, %v52_v14   ;;  %v225_v14 = vld [vmem:[%s767_s3 + $0x20] sm:$0xff] }
  0x18   :  { %61 = vperm.xlu1 %474, %v51_v16   ;;  %v227_v16 = vld [vmem:[%s767_s3 + $0x30] sm:$0xff] }
  0x1a   :  { %452 = vmatpush.xpose.msk.msra.mxu3 %vm99_vm0, %v36_v9  ;;  %451 = vmatpush.xpose.msk.msra.mxu2 %vm99_vm0, %v36_v9 }
  0x1b   :  { %412 = vmatpush.xpose.msk.msra.mxu0 %vm99_vm0, %v36_v9 }
  0x1d   :  { %274 = vperm.xlu2 %475, %v236_v34  }
  0x1e   :  { %454 = vmatpush.xpose.msk.msra.mxu3 %vm99_vm0, %v35_v11  ;;  %453 = vmatpush.xpose.msk.msra.mxu2 %vm99_vm0, %v35_v11 }
  0x1f   :  { %413 = vmatpush.xpose.msk.msra.mxu0 %vm99_vm0, %v35_v11  ;;  %269 = vperm.xlu0 %473, %v235_v18   ;;  %v222_v11 = vld [vmem:[%s767_s3 + $0x8] sm:$0xff] }
  0x20   :  { %264 = vperm.xlu1 %474, %v234_v20  }
  0x22   :  { %456 = vmatpush.xpose.msk.msra.mxu3 %vm99_vm0, %v34_v13  ;;  %455 = vmatpush.xpose.msk.msra.mxu2 %vm99_vm0, %v34_v13 }
  0x23   :  { %414 = vmatpush.xpose.msk.msra.mxu0 %vm99_vm0, %v34_v13  ;;  %v224_v13 = vld [vmem:[%s767_s3 + $0x18] sm:$0xff] }
  0x25   :  { %259 = vperm.xlu2 %475, %v233_v38  }
  0x26   :  { %458 = vmatpush.xpose.msk.msra.mxu3 %vm99_vm0, %v33_v15  ;;  %457 = vmatpush.xpose.msk.msra.mxu2 %vm99_vm0, %v33_v15 }
  0x27   :  { %415 = vmatpush.xpose.msk.msra.mxu0 %vm99_vm0, %v33_v15  ;;  %254 = vperm.xlu0 %473, %v232_v22   ;;  %v226_v15 = vld [vmem:[%s767_s3 + $0x28] sm:$0xff] }
  0x28   :  { %249 = vperm.xlu1 %474, %v231_v25  }
  0x2a   :  { %460 = vmatpush.xpose.msk.msra.mxu3 %vm99_vm0, %v32_v17  ;;  %459 = vmatpush.xpose.msk.msra.mxu2 %vm99_vm0, %v32_v17 }
  0x2b   :  { %416 = vmatpush.xpose.msk.msra.mxu0 %vm99_vm0, %v32_v17  ;;  %v228_v17 = vld [vmem:[%s767_s3 + $0x38] sm:$0xff] }
  0x2d   :  { %244 = vperm.xlu2 %475, %v230_v41  }
  0x2e   :  { %462 = vmatpush.xpose.msk.msra.mxu3 %vm99_vm0, %v31_v19  ;;  %461 = vmatpush.xpose.msk.msra.mxu2 %vm99_vm0, %v31_v19 }
  0x2f   :  { %417 = vmatpush.xpose.msk.msra.mxu0 %vm99_vm0, %v31_v19  ;;  %239 = vperm.xlu0 %473, %v229_v28  }
  0x30   :  { %355 = vperm.xlu1 %474, %v352_v30  }
  0x32   :  { %464 = vmatpush.xpose.msk.msra.mxu3 %vm99_vm0, %v30_v21  ;;  %463 = vmatpush.xpose.msk.msra.mxu2 %vm99_vm0, %v30_v21 }
  0x33   :  { %418 = vmatpush.xpose.msk.msra.mxu0 %vm99_vm0, %v30_v21 }
  0x36   :  { %466 = vmatpush.xpose.msk.msra.mxu3 %vm99_vm0, %v29_v24  ;;  %465 = vmatpush.xpose.msk.msra.mxu2 %vm99_vm0, %v29_v24 }
  0x37   :  { %419 = vmatpush.xpose.msk.msra.mxu0 %vm99_vm0, %v29_v24 }
  0x3a   :  { %468 = vmatpush.xpose.msk.msra.mxu3 %vm99_vm0, %v28_v26  ;;  %467 = vmatpush.xpose.msk.msra.mxu2 %vm99_vm0, %v28_v26 }
  0x3b   :  { %420 = vmatpush.xpose.msk.msra.mxu0 %vm99_vm0, %v28_v26 }
  0x3e   :  { %470 = vmatpush.xpose.msk.msra.mxu3 %vm99_vm0, %v27_v29  ;;  %469 = vmatpush.xpose.msk.msra.mxu2 %vm99_vm0, %v27_v29 }
  0x3f   :  { %421 = vmatpush.xpose.msk.msra.mxu0 %vm99_vm0, %v27_v29 }
  0x41   :  { %427 = vmatmul.msk.f32.vlgmr.msra.gmra.mxu3 %vm99_vm0, %v48_v31  ;;  %425 = vmatmul.msk.f32.vlgmr.msra.gmra.mxu2 %vm99_vm0, %v46_v32 }
  0x42   :  { %422 = vmatmul.msk.f32.vlgmr.msra.gmra.mxu0 %vm99_vm0, %v43_v33 }
  0x49   :  { %428 = vmatmul.msk.f32.gmra.mxu3 %vm99_vm0, %v49_v35  ;;  %426 = vmatmul.msk.f32.gmra.mxu2 %vm99_vm0, %v47_v36 }
  0x4a   :  { %423 = vmatmul.msk.f32.gmra.mxu0 %vm99_vm0, %v44_v37 }
  0x51   :  { %429 = vmatmul.msk.f32.gmra.mxu3 %vm99_vm0, %v50_v39 }
  0x52   :  { %424 = vmatmul.msk.f32.gmra.mxu0 %vm99_vm0, %v45_v40 }
  0x67   :  { %v77_v49 = vpop.permute.xlu2 %76 }
  0x6f   :  { %v72_v63 = vpop.permute.xlu2 %71 }
  0x77   :  { %v275_v24 = vpop.permute.xlu2 %274 }
  0x79   :  { %v97_v44 = vpop.permute.xlu0 %96 }
  0x7a   :  { %v87_v45 = vpop.permute.xlu1 %86 }
  0x7f   :  { %v260_v28 = vpop.permute.xlu2 %259 }
  0x81   :  { %v92_v50 = vpop.permute.xlu0 %91 }
  0x82   :  { %v82_v54 = vpop.permute.xlu1 %81 }
  0x89   :  { %v67_v2 = vpop.permute.xlu0 %66 }
  0x8a   :  { %v62_v5 = vpop.permute.xlu1 %61 }
  0x91   :  { %v270_v25 = vpop.permute.xlu0 %269 }
  0x92   :  { %v265_v27 = vpop.permute.xlu1 %264 }
  0x99   :  { %v255_v32 = vpop.permute.xlu0 %254 }
  0x9a   :  { %v250_v39 = vpop.permute.xlu1 %249 }
  0xbf   :  { %v189_v43 = vpop.f32.mrf.mxu0 }
  0xc0   :  { %v190_v6 = vadd.f32 %v189_v43, %v62_v5 }
  0xc2   :  { %v213_v9 = vmax.f32 %v190_v6, 0.0 }
  0xc4   :  { %v204_v42 = vpop.f32.mrf.mxu3  ;;  %v198_v46 = vpop.f32.mrf.mxu2 }
  0xc5   :  { %v205_v56 = vadd.f32 %v204_v42, %v87_v45  ;;  %v199_v62 = vadd.f32 %v198_v46, %v77_v49  ;;  %v245_v42 = vpop.permute.xlu2 %244  ;;  %v240_v45 = vpop.permute.xlu0 %239 }
  0xc7   :  { %v192_v48 = vpop.f32.mrf.mxu0  ;;  %v218_v61 = vmax.f32 %v205_v56, 0.0  ;;  %v216_v3 = vmax.f32 %v199_v62, 0.0 }
  0xc8   :  { %v193_v4 = vadd.f32 %v192_v48, %v67_v2 }
  0xca   :  { %v214_v8 = vmax.f32 %v193_v4, 0.0 }
  0xcc   :  { %v207_v47 = vpop.f32.mrf.mxu3  ;;  %v201_v55 = vpop.f32.mrf.mxu2 }
  0xcd   :  { %v208_v52 = vadd.f32 %v207_v47, %v92_v50  ;;  %v202_v59 = vadd.f32 %v201_v55, %v82_v54  ;;  %v351_v50 = vld [vmem:[%s769_s5] sm:$0x3]  ;;  %v385_v55 = vlaneseq }
  0xcf   :  { %v219_v58 = vmax.f32 %v208_v52, 0.0  ;;  %v195_v60 = vpop.f32.mrf.mxu0  ;;  %v217_v0 = vmax.f32 %v202_v59, 0.0  ;;  %v386_v56 = vshrl.u32 %v385_v55, 7 }
  0xd0   :  { %v196_v1 = vadd.f32 %v195_v60, %v72_v63 }
  0xd1   :  { %vm387_vm2 = vcmp.eq.s32.totalorder %v386_v56, 0 }
  0xd2   :  { %v215_v7 = vmax.f32 %v196_v1, 0.0 }
  0xd4   :  { %v210_v51 = vpop.f32.mrf.mxu3 }
  0xd5   :  { %v211_v53 = vadd.f32 %v210_v51, %v97_v44  ;;  %v356_v51 = vpop.permute.xlu1 %355 }
  0xd7   :  { %v220_v57 = vmax.f32 %v211_v53, 0.0 }
  0xd9   :  { %310 = vmatpush.msra.mxu1 %v220_v57 }
  0xdb   :  { %311 = vmatpush.msra.mxu1 %v219_v58 }
  0xdd   :  { %312 = vmatpush.msra.mxu1 %v218_v61 }
  0xdf   :  { %313 = vmatpush.msra.mxu1 %v217_v0 }
  0xe1   :  { %314 = vmatpush.msra.mxu1 %v216_v3 }
  0xe3   :  { %315 = vmatpush.msra.mxu1 %v215_v7 }
  0xe5   :  { %316 = vmatpush.msra.mxu1 %v214_v8 }
  0xe7   :  { %317 = vmatpush.msra.mxu1 %v213_v9 }
  0xe8   :  { %430 = vmatmul.msk.f32.vlgmr.msra.gmra.mxu1 %vm277_vm1, %v221_v10 }
  0xf0   :  { %431 = vmatmul.msk.f32.gmra.mxu1 %vm277_vm1, %v222_v11 }
  0xf8   :  { %432 = vmatmul.msk.f32.gmra.mxu1 %vm277_vm1, %v223_v12 }
 0x100   :  { %433 = vmatmul.msk.f32.gmra.mxu1 %vm277_vm1, %v224_v13 }
 0x108   :  { %434 = vmatmul.msk.f32.gmra.mxu1 %vm277_vm1, %v225_v14 }
 0x110   :  { %435 = vmatmul.msk.f32.gmra.mxu1 %vm277_vm1, %v226_v15 }
 0x118   :  { %436 = vmatmul.msk.f32.gmra.mxu1 %vm277_vm1, %v227_v16 }
 0x120   :  { %437 = vmatmul.msk.f32.gmra.mxu1 %vm277_vm1, %v228_v17 }
 0x165   :  { %v319_v18 = vpop.f32.mrf.mxu1 }
 0x166   :  { %v320_v46 = vadd.f32 %v319_v18, %v240_v45 }
 0x168   :  { %v343_v49 = vmax.f32 %v320_v46, 0.0 }
 0x16d   :  { %v322_v19 = vpop.f32.mrf.mxu1 }
 0x16e   :  { %v323_v43 = vadd.f32 %v322_v19, %v245_v42 }
 0x170   :  { %v344_v48 = vmax.f32 %v323_v43, 0.0 }
 0x175   :  { %v325_v20 = vpop.f32.mrf.mxu1 }
 0x176   :  { %v326_v40 = vadd.f32 %v325_v20, %v250_v39 }
 0x178   :  { %v345_v47 = vmax.f32 %v326_v40, 0.0 }
 0x17d   :  { %v328_v21 = vpop.f32.mrf.mxu1 }
 0x17e   :  { %v329_v37 = vadd.f32 %v328_v21, %v255_v32 }
 0x180   :  { %v346_v44 = vmax.f32 %v329_v37, 0.0 }
 0x185   :  { %v331_v22 = vpop.f32.mrf.mxu1 }
 0x186   :  { %v332_v35 = vadd.f32 %v331_v22, %v260_v28 }
 0x188   :  { %v347_v41 = vmax.f32 %v332_v35, 0.0 }
 0x18d   :  { %v334_v23 = vpop.f32.mrf.mxu1 }
 0x18e   :  { %v335_v33 = vadd.f32 %v334_v23, %v265_v27 }
 0x190   :  { %v348_v38 = vmax.f32 %v335_v33, 0.0 }
 0x195   :  { %v337_v26 = vpop.f32.mrf.mxu1 }
 0x196   :  { %v338_v30 = vadd.f32 %v337_v26, %v270_v25 }
 0x198   :  { %v349_v36 = vmax.f32 %v338_v30, 0.0 }
 0x19d   :  { %v340_v29 = vpop.f32.mrf.mxu1 }
 0x19e   :  { %v341_v31 = vadd.f32 %v340_v29, %v275_v24 }
 0x1a0   :  { %v350_v34 = vmax.f32 %v341_v31, 0.0 }
 0x1a2   :  { %369 = vmatpush.msrb.mxu2 %v350_v34 }
 0x1a4   :  { %370 = vmatpush.msrb.mxu2 %v349_v36 }
 0x1a6   :  { %371 = vmatpush.msrb.mxu2 %v348_v38 }
 0x1a8   :  { %372 = vmatpush.msrb.mxu2 %v347_v41 }
 0x1aa   :  { %373 = vmatpush.msrb.mxu2 %v346_v44 }
 0x1ac   :  { %374 = vmatpush.msrb.mxu2 %v345_v47 }
 0x1ae   :  { %375 = vmatpush.msrb.mxu2 %v344_v48 }
 0x1b0   :  { %376 = vmatpush.msrb.mxu2 %v343_v49 }
 0x1b1   :  { %438 = vmatmul.msk.f32.vlgmr.msrb.gmra.mxu2 %vm277_vm1, %v351_v50 }
 0x234   :  { %v378_v52 = vpop.f32.mrf.mxu2 }
 0x235   :  { %v379_v53 = vadd.f32 %v378_v52, %v356_v51 }
 0x237   :  { %v381_v54 = vmul.f32 1.442695, %v379_v53 }
 0x239   :  { %476 = vpow2.f32 %v381_v54 }
 0x23f   :  { %v477_v57 = vpop.eup %476 }
 0x240   :  { %v383_v58 = vmax.f32 %v477_v57, 0.01 }
 0x242   :  { %v384_v59 = vmin.f32 %v383_v58, 10.0 }
 0x244   :  { %v388_v60 = vsel %vm387_vm2, %v379_v53, %v384_v59 }
 0x245   :  { %389 = vst [vmem:[#allocation2] sm:$0x3] %v388_v60 }
 0x246   :  { %400 = dma.vmem_to_hbm [thread:$0]  %s396_s24, 32, %s398_s27, [#allocation3]  }
 0x247   :  { %502 = dma.done.wait [#allocation3], 32  }
 0x248   :  { %503 = vsyncadd [#allocation3], 4294967264 }
 0x249   :  { %405 = vsyncpa [#allocation3], 1 }

</bundles_post_ra>
